<compile_context>
chip_gen: v6e
topology: v6e:2x2x1
jax: 0.10.0
libtpu: 0.0.40
codegen_flags: <defaults>
</compile_context>

<pallas_src>
import functools

import jax
import jax.numpy as jnp
from jax import lax
from jax.experimental import pallas as pl
from jax.experimental.pallas import tpu as pltpu


def _attweight_kernel(q_ref, k_ref, qw_ref, qb_ref, kw_ref, kb_ref, out_ref,
                      *, num_layers, compute_dtype):
    """One batch TILE per grid step.

    q_ref : (Bt, Nq, Dp)   query tile (compute_dtype)
    k_ref : (Bt, Nk, Dp)   key tile   (compute_dtype)
    qw_ref: (L, Dp, Dp)    q-MLP weights (in, out) per layer (compute_dtype)
    qb_ref: (L, 1, Dp)     q-MLP biases per layer (float32)
    kw_ref: (L, Dp, Dp)    k-MLP weights
    kb_ref: (L, 1, Dp)     k-MLP biases
    out_ref: (Bt, Nq, Nk)  attention weights (float32)
    """
    Bt, Nq, Dp = q_ref.shape
    _, Nk, _ = k_ref.shape

    # Flatten the batch tile into the matmul M dimension: each MLP layer is a
    # single (Bt*N, Dp) x (Dp, Dp) MXU matmul instead of Bt tiny ones.
    q = q_ref[...].reshape(Bt * Nq, Dp)
    k = k_ref[...].reshape(Bt * Nk, Dp)

    for layer in range(num_layers):
        qb = qb_ref[layer]  # (1, Dp) f32, broadcasts over rows
        kb = kb_ref[layer]
        q = jnp.dot(q.astype(compute_dtype), qw_ref[layer],
                    preferred_element_type=jnp.float32) + qb
        k = jnp.dot(k.astype(compute_dtype), kw_ref[layer],
                    preferred_element_type=jnp.float32) + kb
        if layer < num_layers - 1:
            q = jnp.maximum(q, 0.0)   # ReLU in f32
            k = jnp.maximum(k, 0.0)
            # TODO(synk): dropout between hidden layers is identity in eval
            # mode; a training variant would use pltpu.prng_random_bits here.

    # attn[b] = q[b] @ k[b]^T, transpose folded into the MXU by contracting
    # the last (feature) axes of both operands.
    q3 = q.reshape(Bt, Nq, Dp).astype(compute_dtype)
    k3 = k.reshape(Bt, Nk, Dp).astype(compute_dtype)
    scores = lax.dot_general(
        q3, k3,
        dimension_numbers=(((2,), (2,)), ((0,), (0,))),
        preferred_element_type=jnp.float32)
    out_ref[...] = scores.astype(out_ref.dtype)


def _round_up(x, m):
    return ((x + m - 1) // m) * m


def _choose_block_b(batch, rows_per_batch):
    """Batch tile: feed the MXU ~256 rows/step, but keep >=2 grid steps
    (both v7x TensorCores busy) whenever the batch allows it."""
    target = max(1, 256 // max(rows_per_batch, 1))
    divisors = [d for d in range(1, batch + 1) if batch % d == 0]
    cand = [d for d in divisors if d <= target]
    bt = cand[-1] if cand else 1
    if batch // bt < 2:
        two_step = [d for d in divisors if batch // d >= 2]
        if two_step:
            bt = two_step[-1]
    return bt


def att_weight_head(query, key, q_weights, q_biases, k_weights, k_biases,
                    *, block_b=None, use_bf16=True):
    """Pallas wrapper.

    query:     (B, Nq, D) float32
    key:       (B, Nk, D) float32
    q_weights: (L, D, D), q_biases: (L, 1, D)   (same for k_*)
    returns    (B, Nq, Nk) float32
    """
    B, Nq, D = query.shape
    _, Nk, _ = key.shape
    L = q_weights.shape[0]

    # ---- layout plumbing (once, in the wrapper) ---------------------------
    Dp = _round_up(D, 128)    # feature / contraction axis -> full lanes
    Nqp = _round_up(Nq, 8)    # sublane axis of q and of the output
    Nkp = _round_up(Nk, 128)  # lane axis of the output -> unmasked stores

    act_dtype = jnp.bfloat16 if use_bf16 else jnp.float32

    # Zero padding keeps the math exact for the un-padded region (padded
    # weight rows/cols are zero, padded output rows/cols are sliced away).
    q_p = jnp.pad(query, ((0, 0), (0, Nqp - Nq), (0, Dp - D))).astype(act_dtype)
    k_p = jnp.pad(key,   ((0, 0), (0, Nkp - Nk), (0, Dp - D))).astype(act_dtype)
    qw = jnp.pad(q_weights, ((0, 0), (0, Dp - D), (0, Dp - D))).astype(act_dtype)
    kw = jnp.pad(k_weights, ((0, 0), (0, Dp - D), (0, Dp - D))).astype(act_dtype)
    qb = jnp.pad(q_biases, ((0, 0), (0, 0), (0, Dp - D))).astype(jnp.float32)
    kb = jnp.pad(k_biases, ((0, 0), (0, 0), (0, Dp - D))).astype(jnp.float32)

    Bt = block_b if block_b is not None else _choose_block_b(B, Nqp)
    assert B % Bt == 0, "block_b must divide the batch"
    grid = (B // Bt,)

    kernel = functools.partial(_attweight_kernel, num_layers=L,
                               compute_dtype=act_dtype)

    # VMEM budget (double-buffered activations/out + weights); clamp so a big
    # tile never exceeds the v7x 64 MiB physical ceiling (leave headroom).
    elt = jnp.dtype(act_dtype).itemsize
    tile_bytes = (2 * Bt * Nqp * Dp * elt + 2 * Bt * Nkp * Dp * elt
                  + 2 * Bt * Nqp * Nkp * 4
                  + 2 * 2 * L * Dp * Dp * elt + 2 * 2 * L * Dp * 4)
    vmem_limit = int(min(48 * 1024 * 1024, max(16 * 1024 * 1024, 4 * tile_bytes)))

    grid_spec = pltpu.PrefetchScalarGridSpec(
        num_scalar_prefetch=0,
        grid=grid,
        in_specs=[
            pl.BlockSpec((Bt, Nqp, Dp), lambda b: (b, 0, 0)),   # query tile
            pl.BlockSpec((Bt, Nkp, Dp), lambda b: (b, 0, 0)),   # key tile
            pl.BlockSpec((L, Dp, Dp), lambda b: (0, 0, 0)),     # q MLP weights
            pl.BlockSpec((L, 1, Dp), lambda b: (0, 0, 0)),      # q MLP biases
            pl.BlockSpec((L, Dp, Dp), lambda b: (0, 0, 0)),     # k MLP weights
            pl.BlockSpec((L, 1, Dp), lambda b: (0, 0, 0)),      # k MLP biases
        ],
        out_specs=pl.BlockSpec((Bt, Nqp, Nkp), lambda b: (b, 0, 0)),
    )

    out = pl.pallas_call(
        kernel,
        out_shape=jax.ShapeDtypeStruct((B, Nqp, Nkp), jnp.float32),
        grid_spec=grid_spec,
        compiler_params=pltpu.CompilerParams(
            dimension_semantics=("parallel",),
            vmem_limit_bytes=vmem_limit),
    )(q_p, k_p, qw, qb, kw, kb)

    return out[:, :Nq, :Nk]


def _mlp_ref(x, weights, biases):
    """Pure-JAX reference MLP (eval mode)."""
    L = weights.shape[0]
    for layer in range(L):
        x = x @ weights[layer] + biases[layer]
        if layer < L - 1:
            x = jnp.maximum(x, 0.0)
    return x


def _ref(query, key, qw, qb, kw, kb):
    q = _mlp_ref(query, qw, qb)
    k = _mlp_ref(key, kw, kb)
    return jnp.einsum("bqd,bkd->bqk", q, k)


if __name__ == "__main__":
    # Module config: feature_dim=32, num_layers=2, dropout=0.0 (eval).
    B, Nq, Nk, D, L = 2, 8, 8, 32, 2

    key0 = jax.random.PRNGKey(0)
    k_query, k_key, k_qw, k_qb, k_kw, k_kb = jax.random.split(key0, 6)

    query = jax.random.normal(k_query, (B, Nq, D), dtype=jnp.float32)
    key_t = jax.random.normal(k_key, (B, Nk, D), dtype=jnp.float32)

    # Deterministic synthetic parameters (Linear: weight (in,out), bias (1,D)).
    scale = 1.0 / jnp.sqrt(jnp.float32(D))
    q_weights = jax.random.normal(k_qw, (L, D, D), dtype=jnp.float32) * scale
    q_biases = jax.random.normal(k_qb, (L, 1, D), dtype=jnp.float32) * 0.1
    k_weights = jax.random.normal(k_kw, (L, D, D), dtype=jnp.float32) * scale
    k_biases = jax.random.normal(k_kb, (L, 1, D), dtype=jnp.float32) * 0.1

    expected = _ref(query, key_t, q_weights, q_biases, k_weights, k_biases)

    # Exact-semantics check: f32 path.
    out_f32 = jax.block_until_ready(att_weight_head(
        query, key_t, q_weights, q_biases, k_weights, k_biases, use_bf16=False))
    assert out_f32.shape == (B, Nq, Nk)
    assert jnp.allclose(out_f32, expected, atol=1e-4, rtol=1e-4), \
        "f32 kernel mismatch vs JAX reference"

    # Fast path: bf16 matmul inputs with f32 accumulation (v6e/v7x MXU peak).
    out_bf16 = jax.block_until_ready(att_weight_head(
        query, key_t, q_weights, q_biases, k_weights, k_biases, use_bf16=True))
    assert out_bf16.shape == (B, Nq, Nk)
    err = float(jnp.max(jnp.abs(out_bf16 - expected)))
    ref_scale = float(jnp.max(jnp.abs(expected)))
    assert err <= 0.05 * ref_scale + 1e-3, \
        f"bf16 kernel error too large: {err} vs scale {ref_scale}"

    print("KERNEL_OK")
</pallas_src>

<mosaic_0001>
module attributes {stable_mosaic.version = 11 : i64} {
  func.func @_attweight_kernel(%arg0: i32, %arg1: memref<1x8x128xf32, #tpu.memory_space<vmem>>, %arg2: memref<1x128x128xf32, #tpu.memory_space<vmem>>, %arg3: memref<2x128x128xf32, #tpu.memory_space<vmem>>, %arg4: memref<2x1x128xf32, #tpu.memory_space<vmem>>, %arg5: memref<2x128x128xf32, #tpu.memory_space<vmem>>, %arg6: memref<2x1x128xf32, #tpu.memory_space<vmem>>, %arg7: memref<1x8x128xf32, #tpu.memory_space<vmem>>) attributes {dimension_semantics = [#tpu.dimension_semantics<parallel>], iteration_bounds = array<i64: 2>, scalar_prefetch = 0 : i64, scratch_operands = 0 : i64, tpu.core_type = #tpu.core_type<tc>, window_params = [{transform_indices = @transform_0, window_bounds = array<i64: 1, 8, 128>}, {transform_indices = @transform_1, window_bounds = array<i64: 1, 128, 128>}, {pipeline_mode = #tpu.pipeline_mode<synchronous>, transform_indices = @transform_2, window_bounds = array<i64: 2, 128, 128>}, {pipeline_mode = #tpu.pipeline_mode<synchronous>, transform_indices = @transform_3, window_bounds = array<i64: 2, 1, 128>}, {pipeline_mode = #tpu.pipeline_mode<synchronous>, transform_indices = @transform_4, window_bounds = array<i64: 2, 128, 128>}, {pipeline_mode = #tpu.pipeline_mode<synchronous>, transform_indices = @transform_5, window_bounds = array<i64: 2, 1, 128>}, {transform_indices = @transform_6, window_bounds = array<i64: 1, 8, 128>}]} {
    %c0 = arith.constant 0 : index
    %c0_0 = arith.constant 0 : index
    %c0_1 = arith.constant 0 : index
    %0 = vector.load %arg1[%c0, %c0_0, %c0_1] : memref<1x8x128xf32, #tpu.memory_space<vmem>>, vector<1x8x128xf32>
    %1 = vector.shape_cast %0 : vector<1x8x128xf32> to vector<8x128xf32>
    %c0_2 = arith.constant 0 : index
    %c0_3 = arith.constant 0 : index
    %c0_4 = arith.constant 0 : index
    %2 = vector.load %arg2[%c0_2, %c0_3, %c0_4] : memref<1x128x128xf32, #tpu.memory_space<vmem>>, vector<1x128x128xf32>
    %3 = vector.shape_cast %2 : vector<1x128x128xf32> to vector<128x128xf32>
    %c0_5 = arith.constant 0 : index
    %c0_6 = arith.constant 0 : index
    %c0_7 = arith.constant 0 : index
    %4 = vector.load %arg4[%c0_5, %c0_6, %c0_7] : memref<2x1x128xf32, #tpu.memory_space<vmem>>, vector<1x1x128xf32>
    %5 = vector.shape_cast %4 : vector<1x1x128xf32> to vector<1x128xf32>
    %c0_8 = arith.constant 0 : index
    %c0_9 = arith.constant 0 : index
    %c0_10 = arith.constant 0 : index
    %6 = vector.load %arg6[%c0_8, %c0_9, %c0_10] : memref<2x1x128xf32, #tpu.memory_space<vmem>>, vector<1x1x128xf32>
    %7 = vector.shape_cast %6 : vector<1x1x128xf32> to vector<1x128xf32>
    %c0_11 = arith.constant 0 : index
    %c0_12 = arith.constant 0 : index
    %c0_13 = arith.constant 0 : index
    %8 = vector.load %arg3[%c0_11, %c0_12, %c0_13] : memref<2x128x128xf32, #tpu.memory_space<vmem>>, vector<1x128x128xf32>
    %9 = vector.shape_cast %8 : vector<1x128x128xf32> to vector<128x128xf32>
    %cst = arith.constant dense<0.000000e+00> : vector<8x128xf32>
    %10 = tpu.matmul %1, %9, %cst {dimension_numbers = #tpu.dot_dimension_numbers<[1], [0], [0], [1], [0, 0, 1, 1], [], []>} : vector<8x128xf32>, vector<128x128xf32>, vector<8x128xf32> -> vector<8x128xf32>
    %11 = vector.broadcast %5 : vector<1x128xf32> to vector<8x128xf32>
    %12 = arith.addf %10, %11 : vector<8x128xf32>
    %c0_14 = arith.constant 0 : index
    %c0_15 = arith.constant 0 : index
    %c0_16 = arith.constant 0 : index
    %13 = vector.load %arg5[%c0_14, %c0_15, %c0_16] : memref<2x128x128xf32, #tpu.memory_space<vmem>>, vector<1x128x128xf32>
    %14 = vector.shape_cast %13 : vector<1x128x128xf32> to vector<128x128xf32>
    %cst_17 = arith.constant dense<0.000000e+00> : vector<128x128xf32>
    %15 = tpu.matmul %3, %14, %cst_17 {dimension_numbers = #tpu.dot_dimension_numbers<[1], [0], [0], [1], [0, 0, 1, 1], [], []>} : vector<128x128xf32>, vector<128x128xf32>, vector<128x128xf32> -> vector<128x128xf32>
    %16 = vector.broadcast %7 : vector<1x128xf32> to vector<128x128xf32>
    %17 = arith.addf %15, %16 : vector<128x128xf32>
    %cst_18 = arith.constant 0.000000e+00 : f32
    %18 = vector.broadcast %cst_18 : f32 to vector<8x128xf32>
    %19 = arith.maximumf %12, %18 : vector<8x128xf32>
    %cst_19 = arith.constant 0.000000e+00 : f32
    %20 = vector.broadcast %cst_19 : f32 to vector<128x128xf32>
    %21 = arith.maximumf %17, %20 : vector<128x128xf32>
    %c1 = arith.constant 1 : index
    %c0_20 = arith.constant 0 : index
    %c0_21 = arith.constant 0 : index
    %22 = vector.load %arg4[%c1, %c0_20, %c0_21] : memref<2x1x128xf32, #tpu.memory_space<vmem>>, vector<1x1x128xf32>
    %23 = vector.shape_cast %22 : vector<1x1x128xf32> to vector<1x128xf32>
    %c1_22 = arith.constant 1 : index
    %c0_23 = arith.constant 0 : index
    %c0_24 = arith.constant 0 : index
    %24 = vector.load %arg6[%c1_22, %c0_23, %c0_24] : memref<2x1x128xf32, #tpu.memory_space<vmem>>, vector<1x1x128xf32>
    %25 = vector.shape_cast %24 : vector<1x1x128xf32> to vector<1x128xf32>
    %c1_25 = arith.constant 1 : index
    %c0_26 = arith.constant 0 : index
    %c0_27 = arith.constant 0 : index
    %26 = vector.load %arg3[%c1_25, %c0_26, %c0_27] : memref<2x128x128xf32, #tpu.memory_space<vmem>>, vector<1x128x128xf32>
    %27 = vector.shape_cast %26 : vector<1x128x128xf32> to vector<128x128xf32>
    %cst_28 = arith.constant dense<0.000000e+00> : vector<8x128xf32>
    %28 = tpu.matmul %19, %27, %cst_28 {dimension_numbers = #tpu.dot_dimension_numbers<[1], [0], [0], [1], [0, 0, 1, 1], [], []>} : vector<8x128xf32>, vector<128x128xf32>, vector<8x128xf32> -> vector<8x128xf32>
    %29 = vector.broadcast %23 : vector<1x128xf32> to vector<8x128xf32>
    %30 = arith.addf %28, %29 : vector<8x128xf32>
    %c1_29 = arith.constant 1 : index
    %c0_30 = arith.constant 0 : index
    %c0_31 = arith.constant 0 : index
    %31 = vector.load %arg5[%c1_29, %c0_30, %c0_31] : memref<2x128x128xf32, #tpu.memory_space<vmem>>, vector<1x128x128xf32>
    %32 = vector.shape_cast %31 : vector<1x128x128xf32> to vector<128x128xf32>
    %cst_32 = arith.constant dense<0.000000e+00> : vector<128x128xf32>
    %33 = tpu.matmul %21, %32, %cst_32 {dimension_numbers = #tpu.dot_dimension_numbers<[1], [0], [0], [1], [0, 0, 1, 1], [], []>} : vector<128x128xf32>, vector<128x128xf32>, vector<128x128xf32> -> vector<128x128xf32>
    %34 = vector.broadcast %25 : vector<1x128xf32> to vector<128x128xf32>
    %35 = arith.addf %33, %34 : vector<128x128xf32>
    %36 = vector.shape_cast %30 : vector<8x128xf32> to vector<1x8x128xf32>
    %37 = vector.shape_cast %35 : vector<128x128xf32> to vector<1x128x128xf32>
    %cst_33 = arith.constant dense<0.000000e+00> : vector<1x8x128xf32>
    %38 = tpu.matmul %36, %37, %cst_33 {dimension_numbers = #tpu.dot_dimension_numbers<[2], [2], [1], [1], [0, 0, 0, 1, 1, 1], [0], [0]>} : vector<1x8x128xf32>, vector<1x128x128xf32>, vector<1x8x128xf32> -> vector<1x8x128xf32>
    %c0_34 = arith.constant 0 : index
    %c0_35 = arith.constant 0 : index
    %c0_36 = arith.constant 0 : index
    %39 = vector.load %arg7[%c0_34, %c0_35, %c0_36] : memref<1x8x128xf32, #tpu.memory_space<vmem>>, vector<1x8x128xf32>
    tpu.vector_store %arg7[%c0_34, %c0_35, %c0_36], %38 {strides = array<i32>} : memref<1x8x128xf32, #tpu.memory_space<vmem>>, vector<1x8x128xf32>,
    return
  }
  func.func @transform_0(%arg0: i32) -> (i32, i32, i32) {
    %c0_i32 = arith.constant 0 : i32
    %c0_i32_0 = arith.constant 0 : i32
    %c0_i32_1 = arith.constant 0 : i32
    return %arg0, %c0_i32, %c0_i32_0 : i32, i32, i32
  }
  func.func @transform_1(%arg0: i32) -> (i32, i32, i32) {
    %c0_i32 = arith.constant 0 : i32
    %c0_i32_0 = arith.constant 0 : i32
    %c0_i32_1 = arith.constant 0 : i32
    return %arg0, %c0_i32, %c0_i32_0 : i32, i32, i32
  }
  func.func @transform_2(%arg0: i32) -> (i32, i32, i32) {
    %c0_i32 = arith.constant 0 : i32
    %c0_i32_0 = arith.constant 0 : i32
    %c0_i32_1 = arith.constant 0 : i32
    %c0_i32_2 = arith.constant 0 : i32
    return %c0_i32, %c0_i32_0, %c0_i32_1 : i32, i32, i32
  }
  func.func @transform_3(%arg0: i32) -> (i32, i32, i32) {
    %c0_i32 = arith.constant 0 : i32
    %c0_i32_0 = arith.constant 0 : i32
    %c0_i32_1 = arith.constant 0 : i32
    %c0_i32_2 = arith.constant 0 : i32
    return %c0_i32, %c0_i32_0, %c0_i32_1 : i32, i32, i32
  }
  func.func @transform_4(%arg0: i32) -> (i32, i32, i32) {
    %c0_i32 = arith.constant 0 : i32
    %c0_i32_0 = arith.constant 0 : i32
    %c0_i32_1 = arith.constant 0 : i32
    %c0_i32_2 = arith.constant 0 : i32
    return %c0_i32, %c0_i32_0, %c0_i32_1 : i32, i32, i32
  }
  func.func @transform_5(%arg0: i32) -> (i32, i32, i32) {
    %c0_i32 = arith.constant 0 : i32
    %c0_i32_0 = arith.constant 0 : i32
    %c0_i32_1 = arith.constant 0 : i32
    %c0_i32_2 = arith.constant 0 : i32
    return %c0_i32, %c0_i32_0, %c0_i32_1 : i32, i32, i32
  }
  func.func @transform_6(%arg0: i32) -> (i32, i32, i32) {
    %c0_i32 = arith.constant 0 : i32
    %c0_i32_0 = arith.constant 0 : i32
    %c0_i32_1 = arith.constant 0 : i32
    return %arg0, %c0_i32, %c0_i32_0 : i32, i32, i32
  }
}

</mosaic_0001>

<bundles_post_ra>
// kernel: tpu_custom_call.1
= control target key start
LH: loop header
LB: loop body
LE: loop exit
PB: predicated region body
PF: predicated region fallthrough
CT: control target
= control target key end

     0   :  { %s2100_s0 = inlined_call_operand.hbm [shape: f32[2,8,128], index: 0, kind: input, shape index: {}]   ;;  %s2101_s1 = inlined_call_operand.hbm [shape: f32[2,128,128], index: 1, kind: input, shape index: {}]   ;;  %s2102_s2 = inlined_call_operand.hbm [shape: f32[2,128,128], index: 2, kind: input, shape index: {}]   ;;  %s2103_s3 = inlined_call_operand.vmem [shape: f32[2,1,128], index: 3, kind: input, shape index: {}]   ;;  %s2104_s4 = inlined_call_operand.hbm [shape: f32[2,128,128], index: 4, kind: input, shape index: {}]   ;;  %s2105_s5 = inlined_call_operand.vmem [shape: f32[2,1,128], index: 5, kind: input, shape index: {}]   ;;  %s2106_s6 = inlined_call_operand.hbm [shape: f32[2,8,128], index: 6, kind: output, shape index: {}]  }
   0x1   :  { %2112 = sst [smem:[#allocation16_spill]] %s2100_s0 }
   0x2   :  { %2113 = sst [smem:[#allocation17_spill]] %s2102_s2 }
   0x3   :  { %11 = vsyncpa [#allocation3], 0 }
   0x4   :  { %13 = vsyncpa [#allocation3 + $0x1], 0 }
   0x5   :  { %14 = vsyncpa [#allocation6], 0 }
   0x6   :  { %16 = vsyncpa [#allocation6 + $0x1], 0 }
   0x7   :  { %17 = vsyncpa [#allocation9], 0 }
   0x8   :  { %18 = vsyncpa [#allocation4], 0 }
   0x9   :  { %20 = vsyncpa [#allocation4 + $0x1], 0  ;;  %s1758_s21 = smov 0   ;;  %s1760_s22 = smov 0  }
   0xa   :  { %s1762_s23 = smov 0   ;;  %s1764_s24 = smov 0  }
   0xb LB: > { %s1779_s25 = sadd.s32 4294967295, %s1712_s24   ;;  %s1093_s26 = sadd.s32 4294967294, %s1712_s24   ;;  %s1712_s24 = sphi %s1764_s24, %s2137_s24   ;;  %s1708_s23 = sphi %s1762_s23, %s2136_s23   ;;  %s1704_s22 = sphi %s1760_s22, %s2135_s22   ;;  %s1700_s21 = sphi %s1758_s21, %s2134_s21  }
   0xc   : > { %p46_p0 = scmp.ne.s32.totalorder %s1704_s22, %s1700_s21  ;;  %p2109_p1 = scmp.eq.s32.totalorder %s1779_s25, 0 }
   0xd   : > { %p180_p2 = scmp.eq.s32.totalorder %s1779_s25, 1  ;;  %p186_p3 = scmp.eq.s32.totalorder %s1093_s26, 1 }
   0xe   : > { %p1788_p4 = por %p2109_p1, %p46_p0  ;;  %p1094_p5 = scmp.ge.s32.totalorder %s1712_s24, 1 }
   0xf   : > { %p1793_p6 = por %p186_p3, %p46_p0  ;;  %p193_p7 = scmp.lt.s32.totalorder %s1712_s24, 3 }
  0x10   : > { %s2114_s27 = scalar_select %p1788_p4, 1, 0 }
  0x11   : > { %s2115_s28 = scalar_select %p1793_p6, 1, 0 }
  0x12   : > { %p1798_p8 = pnand %p1094_p5, %p193_p7  ;;  %s1714_s30 = smov [#allocation7]  }
  0x13   : > { %s205_s7 = sshll.u32 %s1714_s30, 4  ;;  %s1715_s9 = smov [#allocation8]   ;;  %s206_s7 = int_to_ptr.vmem [resolvable:$true] %s205_s7 }
  0x14   : > { %p1466_p9 = pneg %p1798_p8  ;;  %s221_s10 = sshll.u32 %s1715_s9, 4  ;;  %s222_s10 = int_to_ptr.vmem [resolvable:$true] %s221_s10 }
  0x15   : > { %s1539_s11 = scalar_lea.vmem %s206_s7, 4096  ;;  %p1547_p5 = scmp.lt.s32.totalorder %s206_s7, %s206_s7 }
  0x16   : > { %p1807_p11 = pnand %p1466_p9, %p2109_p1  ;;  %p1540_p13 = scmp.ne.s32.totalorder %s206_s7, %s1539_s11 }
  0x17   : > { %p1548_p7 = scmp.lt.s32.totalorder %s1539_s11, %s1539_s11 }
  0x18   : > { %p1530_p12 = pneg %p1807_p11 }
  0x19   : > { %p1549_p10 = por %p1548_p7, %p1547_p5 }
  0x1a   : > { %p1542_p0 = pnand %p1540_p13, %p1530_p12 }
  0x1c   : > { %p1543_p3 = pneg %p1542_p0 }
  0x1e   : > { %p1550_p9 = pnand %p1549_p10, %p1543_p3 }
  0x20   : > { %1553 = shalt.err (!%p1550_p9)
}
  0x21   : > { %s2107_s12 = smov 128   ;;  %s2108_s13 = smov 8  }
  0x22   : > { %s2118_s2 = sld [smem:[#allocation17_spill]]  ;;  %s1565_s16 = scalar_lea.vmem %s222_s10, 4096 }
  0x23   : > { %p1566_p13 = scmp.ne.s32.totalorder %s222_s10, %s1565_s16  ;;  %p1573_p10 = scmp.lt.s32.totalorder %s222_s10, %s222_s10 }
  0x24   : > { %p1574_p3 = scmp.lt.s32.totalorder %s1565_s16, %s1565_s16 }
  0x25   : > { %p1568_p0 = pnand %p1566_p13, %p1530_p12 }
  0x26   : > { %p1575_p7 = por %p1574_p3, %p1573_p10 }
  0x27   : > { %p1569_p5 = pneg %p1568_p0 }
  0x28   : > { %1469 = dma.hbm_to_vmem [thread:$0]  (!%p1807_p11), %s2118_s2, 4096, %s206_s7, [#allocation6], %s2107_s12, %s2107_s12, %s2108_s13  }
  0x29   : > { %p1576_p9 = pnand %p1575_p7, %p1569_p5 }
  0x2b   : > { %1579 = shalt.err (!%p1576_p9)
}
  0x2c   : > { %1472 = dma.hbm_to_vmem [thread:$0]  (!%p1807_p11), %s2104_s4, 4096, %s222_s10, [#allocation9], %s2107_s12, %s2107_s12, %s2108_s13  }
  0x2d   : > { %s1836_s19 = sadd.s32 1, %s1712_s24   ;;  %s33_s20 = sadd.s32 1, %s1708_s23 }
  0x2e   : > { %s30_s26 = ssub.s32 %s1712_s24, %s1836_s19  ;;  %p40_p12 = scmp.ne.s32.totalorder %s1708_s23, %s1704_s22 }
  0x2f   : > { %p31_p13 = scmp.eq.s32.totalorder %s30_s26, 0  ;;  %p41_p0 = scmp.eq.s32.totalorder %s1712_s24, 0 }
  0x30   : > { %p1846_p5 = por %p180_p2, %p40_p12  ;;  %p1486_p10 = scmp.lt.s32.totalorder %s1712_s24, 2 }
  0x31   : > { %s1852_s7 = scalar_select %p31_p13, %s1708_s23, %s33_s20  }
  0x32   : > { %s2119_s30 = scalar_select %p1846_p5, 1, 0 }
  0x33   : > { %p42_p3 = por %p41_p0, %p40_p12  ;;  %s1855_s8 = sand.u32 1, %s1708_s23  }
  0x34   : > { %s1098_s9 = sshll.u32 %s1855_s8, 3  ;;  %s1099_s10 = sshll.u32 %s1712_s24, 7 }
  0x35   : > { %s2120_s0 = sld [smem:[#allocation16_spill]]  ;;  %s242_s16 = scalar_lea.vmem [#allocation2], %s1098_s9 }
  0x36   : > { %s249_s17 = sshll.u32 %s242_s16, 4  ;;  %p1866_p2 = pnand %p1486_p10, %p42_p3  ;;  %s1864_s17 = int_to_ptr.vmem [resolvable:$true] %s249_s17 }
  0x37   : > { %s239_s12 = scalar_lea.sflag [#allocation3], %s1855_s8 }
  0x38   : > { %p1582_p7 = pneg %p1866_p2 }
  0x3b   : > { %s1862_s15 = scalar_lea.hbm %s2120_s0, %s1099_s10  ;;  %s1585_s11 = scalar_lea.hbm %s2120_s0, 256 }
  0x3c   : > { %s1580_s13 = scalar_lea.hbm %s1862_s15, 128  ;;  %p1586_p13 = scmp.lt.s32.totalorder %s1862_s15, %s2120_s0 }
  0x3d   : > { %p1581_p11 = scmp.ne.s32.totalorder %s1862_s15, %s1580_s13  ;;  %p1587_p0 = scmp.lt.s32.totalorder %s1585_s11, %s1580_s13 }
  0x3f   : > { %p1583_p9 = pnand %p1582_p7, %p1581_p11  ;;  %p1588_p10 = por %p1587_p0, %p1586_p13 }
  0x41   : > { %p1584_p12 = pneg %p1583_p9 }
  0x43   : > { %p1589_p3 = pnand %p1588_p10, %p1584_p12 }
  0x45   : > { %1592 = shalt.err (!%p1589_p3)
}
  0x46   : > { %s1593_s26 = scalar_lea.vmem %s1864_s17, 128  ;;  %s1718_s9 = smov [#allocation2]  }
  0x47   : > { %p1594_p1 = scmp.ne.s32.totalorder %s1864_s17, %s1593_s26  ;;  %s1598_s10 = sshll.u32 %s1718_s9, 4  ;;  %s1599_s10 = int_to_ptr.vmem [resolvable:$false] %s1598_s10 }
  0x48   : > { %s1600_s20 = scalar_lea.vmem %s1599_s10, 256  ;;  %p1601_p6 = scmp.lt.s32.totalorder %s1864_s17, %s1599_s10 }
  0x49   : > { %p1596_p11 = pnand %p1594_p1, %p1582_p7  ;;  %p1602_p5 = scmp.lt.s32.totalorder %s1600_s20, %s1593_s26 }
  0x4b   : > { %p1597_p9 = pneg %p1596_p11  ;;  %p1603_p4 = por %p1602_p5, %p1601_p6 }
  0x4d   : > { %p1604_p13 = pnand %p1603_p4, %p1597_p9 }
  0x4f   : > { %1607 = shalt.err (!%p1604_p13)
}
  0x50   : > { %1476 = dma.hbm_to_vmem [thread:$0]  (!%p1866_p2), %s1862_s15, 128, %s1864_s17, %s239_s12  }
  0x51   : > { %s2122_s13 = sshll.u32 %s1855_s8, 7  ;;  %s1119_s16 = sshll.u32 %s1712_s24, 11 }
  0x52   : > { %s260_s11 = scalar_lea.vmem [#allocation5], %s2122_s13  ;;  %s1905_s26 = scalar_lea.hbm %s2101_s1, %s1119_s16 }
  0x53   : > { %s267_s14 = sshll.u32 %s260_s11, 4  ;;  %s2123_s10 = sand.u32 1, %s1712_s24   ;;  %s1899_s14 = int_to_ptr.vmem [resolvable:$true] %s267_s14 }
  0x54   : > { %s257_s0 = scalar_lea.sflag [#allocation6], %s2123_s10  ;;  %s1608_s2 = scalar_lea.hbm %s1905_s26, 2048 }
  0x55   : > { %p1609_p1 = scmp.ne.s32.totalorder %s1905_s26, %s1608_s2  ;;  %s1613_s15 = scalar_lea.hbm %s2101_s1, 4096 }
  0x56   : > { %p1614_p5 = scmp.lt.s32.totalorder %s1905_s26, %s2101_s1  ;;  %p1615_p12 = scmp.lt.s32.totalorder %s1613_s15, %s1608_s2 }
  0x57   : > { %p1611_p4 = pnand %p1609_p1, %p1582_p7 }
  0x58   : > { %p1616_p0 = por %p1615_p12, %p1614_p5 }
  0x59   : > { %p1612_p6 = pneg %p1611_p4 }
  0x5b   : > { %p1617_p10 = pnand %p1616_p0, %p1612_p6 }
  0x5d   : > { %1620 = shalt.err (!%p1617_p10)
}
  0x5e   : > { %s1621_s11 = scalar_lea.vmem %s1899_s14, 2048  ;;  %s1719_s16 = smov [#allocation5]  }
  0x5f   : > { %p1622_p3 = scmp.ne.s32.totalorder %s1899_s14, %s1621_s11  ;;  %s1626_s9 = sshll.u32 %s1719_s16, 4  ;;  %s1627_s9 = int_to_ptr.vmem [resolvable:$false] %s1626_s9 }
  0x60   : > { %s1628_s20 = scalar_lea.vmem %s1627_s9, 4096  ;;  %p1629_p13 = scmp.lt.s32.totalorder %s1899_s14, %s1627_s9 }
  0x61   : > { %p1624_p11 = pnand %p1622_p3, %p1582_p7  ;;  %p1630_p1 = scmp.lt.s32.totalorder %s1628_s20, %s1621_s11 }
  0x63   : > { %p1625_p9 = pneg %p1624_p11  ;;  %p1631_p4 = por %p1630_p1, %p1629_p13 }
  0x65   : > { %p1632_p5 = pnand %p1631_p4, %p1625_p9 }
  0x67   : > { %1635 = shalt.err (!%p1632_p5)
}
  0x68   : > { %s2124_s2 = smov 8   ;;  %s2125_s10 = smov 128  }
  0x69   : > { %1479 = dma.hbm_to_vmem [thread:$0]  (!%p1866_p2), %s1905_s26, 2048, %s1899_s14, %s257_s0, %s2125_s10, %s2125_s10, %s2124_s2  }
  0x6a   : > { %279 = sbr.rel (%p1798_p8) target bundleno = 881 (0x371), region = 44  ;;  %s1937_s12 = sand.u32 (!%p1798_p8), 1, %s1704_s22  }
  0x6b   : > { %s1104_s8 = sshll.u32 (!%p1798_p8), %s1937_s12, 3  ;;  %s282_s15 = scalar_lea.sflag (!%p1798_p8), [#allocation3], %s1937_s12 }
  0x6c   : > { %s1943_s18 = scalar_lea.vmem (!%p1798_p8), [#allocation2], %s1104_s8  ;;  %p2126_p7 = scmp.ne.s32.totalorder (!%p1798_p8), %s2114_s27, 0 }
  0x6f   : > { %1679 = dma.done.wait (%p2126_p7), %s282_s15, 128  }
  0x70   : > { %1681 = vsyncadd (%p2126_p7), %s282_s15, 4294967168  ;;  %s290_s0 = sand.u32 1, %s1779_s25   ;;  %s1105_s29 = sshll.u32 %s1937_s12, 7 }
  0x71   : > { %s291_s14 = scalar_lea.sflag [#allocation6], %s290_s0  ;;  %s1951_s26 = scalar_lea.vmem [#allocation5], %s1105_s29 }
  0x72   : > { %1683 = dma.done.wait (%p2126_p7), %s291_s14, 2048  }
  0x73   : > { %1685 = vsyncadd (%p2126_p7), %s291_s14, 4294965248  ;;  %p2127_p8 = scmp.eq.s32.totalorder %s1779_s25, 0 }
  0x75   : > { %1687 = dma.done.wait (%p2127_p8), [#allocation6], 4096   ;;  %p2128_p2 = pmov %p2127_p8 }
  0x77   : > { %1689 = vsyncadd (%p2128_p2), [#allocation6], 4294963200  ;;  %p2129_p6 = pmov %p2128_p2 }
  0x78   : > { %p2130_p12 = pmov %p2128_p2 }
  0x79   : > { %1691 = dma.done.wait (%p2129_p6), [#allocation9], 4096  }
  0x7a   : > { %1693 = vsyncadd (%p2130_p12), [#allocation9], 4294963200  ;;  %v1720_v0 = vmov 0.0   ;;  %vm1721_vm0 = vmmov 0   ;;  %v370_v1 = vld [vmem:[#allocation7 + $0x78] sm:$0xff]  ;;  %v369_v2 = vld [vmem:[#allocation7 + $0x70] sm:$0xff] }
  0x7b   : > { %1235 = vmatprep.subr.mxu1 %v1720_v0  ;;  %1267 = vmatprep.mubr.msk.f32.mxu1 %vm1721_vm0, %v1720_v0  ;;  %v368_v3 = vld [vmem:[#allocation7 + $0x68] sm:$0xff]  ;;  %v367_v4 = vld [vmem:[#allocation7 + $0x60] sm:$0xff]  ;;  %v366_v5 = vld [vmem:[#allocation7 + $0x58] sm:$0xff]  ;;  %s335_s10 = scalar_lea.vmem [#allocation10], %s1104_s8  ;;  %p2131_p10 = scmp.ne.s32.totalorder %s2119_s30, 0 }
  0x7c   : > { %1326 = vmatprep.subr.mxu0 %v1720_v0  ;;  %1358 = vmatprep.mubr.msk.f32.mxu0 %vm1721_vm0, %v1720_v0  ;;  %v365_v6 = vld [vmem:[#allocation7 + $0x50] sm:$0xff]  ;;  %v364_v7 = vld [vmem:[#allocation7 + $0x48] sm:$0xff]  ;;  %v363_v8 = vld [vmem:[#allocation7 + $0x40] sm:$0xff]  ;;  %s981_s15 = sshll.u32 %s335_s10, 4  ;;  %s2054_s15 = int_to_ptr.vmem [resolvable:$true] %s981_s15 }
  0x7d   : > { %1236 = vmatpush3.msra.mxu1 %v370_v1  ;;  %v362_v9 = vld [vmem:[#allocation7 + $0x38] sm:$0xff]  ;;  %v361_v10 = vld [vmem:[#allocation7 + $0x30] sm:$0xff]  ;;  %v360_v13 = vld [vmem:[#allocation7 + $0x28] sm:$0xff]  ;;  %s1636_s27 = scalar_lea.vmem %s2054_s15, 128 }
  0x7e   : > { %1237 = vmatprep.subr.mxu1 %v1720_v0  ;;  %v651_v11 = vld [vmem:[#allocation7 + $0xf8] sm:$0xff]  ;;  %v650_v12 = vld [vmem:[#allocation7 + $0xf0] sm:$0xff]  ;;  %v649_v14 = vld [vmem:[#allocation7 + $0xe8] sm:$0xff]  ;;  %p1637_p0 = scmp.ne.s32.totalorder %s2054_s15, %s1636_s27 }
  0x7f   : > { %1238 = vmatpush3.msra.mxu1 %v369_v2  ;;  %1327 = vmatpush3.msra.mxu0 %v651_v11  ;;  %v359_v15 = vld [vmem:[#allocation7 + $0x20] sm:$0xff]  ;;  %v358_v17 = vld [vmem:[#allocation7 + $0x18] sm:$0xff]  ;;  %v357_v19 = vld [vmem:[#allocation7 + $0x10] sm:$0xff] }
  0x80   : > { %1239 = vmatprep.subr.mxu1 %v1720_v0  ;;  %1328 = vmatprep.subr.mxu0 %v1720_v0  ;;  %v648_v16 = vld [vmem:[#allocation7 + $0xe0] sm:$0xff]  ;;  %v647_v18 = vld [vmem:[#allocation7 + $0xd8] sm:$0xff]  ;;  %v646_v20 = vld [vmem:[#allocation7 + $0xd0] sm:$0xff]  ;;  %p1638_p3 = pnand %p1637_p0, %p2131_p10 }
  0x81   : > { %1240 = vmatpush3.msra.mxu1 %v368_v3  ;;  %1329 = vmatpush3.msra.mxu0 %v650_v12  ;;  %v356_v21 = vld [vmem:[#allocation7 + $0x8] sm:$0xff]  ;;  %v355_v23 = vld [vmem:[#allocation7] sm:$0xff]  ;;  %v336_v25 = vld [vmem:[%s1943_s18] sm:$0xff]  ;;  %s1116_s18 = sshll.u32 %s1779_s25, 7  ;;  %s1722_s25 = smov [#allocation10]  }
  0x82   : > { %1241 = vmatprep.subr.mxu1 %v1720_v0  ;;  %1330 = vmatprep.subr.mxu0 %v1720_v0  ;;  %v645_v22 = vld [vmem:[#allocation7 + $0xc8] sm:$0xff]  ;;  %v644_v24 = vld [vmem:[#allocation7 + $0xc0] sm:$0xff]  ;;  %v462_v26 = vld [vmem:[#allocation8 + $0x78] sm:$0xff]  ;;  %s2059_s14 = scalar_lea.hbm %s2106_s6, %s1116_s18  ;;  %p1639_p11 = pneg %p1638_p3 }
  0x83   : > { %1242 = vmatpush3.msra.mxu1 %v367_v4  ;;  %1331 = vmatpush3.msra.mxu0 %v649_v14  ;;  %v337_v27 = vld [vmem:[%s1951_s26] sm:$0xff]  ;;  %v461_v28 = vld [vmem:[#allocation8 + $0x70] sm:$0xff]  ;;  %v643_v29 = vld [vmem:[#allocation7 + $0xb8] sm:$0xff]  ;;  %s1640_s8 = sshll.u32 %s1722_s25, 4  ;;  %s1641_s8 = int_to_ptr.vmem [resolvable:$false] %s1640_s8 }
  0x84   : > { %1243 = vmatprep.subr.mxu1 %v1720_v0  ;;  %1332 = vmatprep.subr.mxu0 %v1720_v0  ;;  %v460_v30 = vld [vmem:[#allocation8 + $0x68] sm:$0xff]  ;;  %v642_v31 = vld [vmem:[#allocation7 + $0xb0] sm:$0xff]  ;;  %v459_v32 = vld [vmem:[#allocation8 + $0x60] sm:$0xff]  ;;  %s1642_s17 = scalar_lea.vmem %s1641_s8, 256  ;;  %p1643_p9 = scmp.lt.s32.totalorder %s2054_s15, %s1641_s8 }
  0x85   : > { %1244 = vmatpush3.msra.mxu1 %v366_v5  ;;  %1333 = vmatpush3.msra.mxu0 %v648_v16  ;;  %v641_v33 = vld [vmem:[#allocation7 + $0xa8] sm:$0xff]  ;;  %v458_v34 = vld [vmem:[#allocation8 + $0x58] sm:$0xff]  ;;  %v640_v35 = vld [vmem:[#allocation7 + $0xa0] sm:$0xff]  ;;  %p1644_p13 = scmp.lt.s32.totalorder %s1642_s17, %s1636_s27 }
  0x86   : > { %1245 = vmatprep.subr.mxu1 %v1720_v0  ;;  %1334 = vmatprep.subr.mxu0 %v1720_v0  ;;  %v457_v36 = vld [vmem:[#allocation8 + $0x50] sm:$0xff]  ;;  %v639_v37 = vld [vmem:[#allocation7 + $0x98] sm:$0xff]  ;;  %v456_v38 = vld [vmem:[#allocation8 + $0x48] sm:$0xff] }
  0x87   : > { %1246 = vmatpush3.msra.mxu1 %v365_v6  ;;  %1335 = vmatpush3.msra.mxu0 %v647_v18  ;;  %v455_v39 = vld [vmem:[#allocation8 + $0x40] sm:$0xff]  ;;  %v454_v40 = vld [vmem:[#allocation8 + $0x38] sm:$0xff]  ;;  %v453_v41 = vld [vmem:[#allocation8 + $0x30] sm:$0xff]  ;;  %p1645_p1 = por %p1644_p13, %p1643_p9 }
  0x88   : > { %1247 = vmatprep.subr.mxu1 %v1720_v0  ;;  %1336 = vmatprep.subr.mxu0 %v1720_v0  ;;  %v452_v42 = vld [vmem:[#allocation8 + $0x28] sm:$0xff]  ;;  %v451_v43 = vld [vmem:[#allocation8 + $0x20] sm:$0xff]  ;;  %v450_v44 = vld [vmem:[#allocation8 + $0x18] sm:$0xff] }
  0x89   : > { %1248 = vmatpush3.msra.mxu1 %v364_v7  ;;  %1337 = vmatpush3.msra.mxu0 %v646_v20  ;;  %v449_v45 = vld [vmem:[#allocation8 + $0x10] sm:$0xff]  ;;  %v448_v46 = vld [vmem:[#allocation8 + $0x8] sm:$0xff]  ;;  %v447_v47 = vld [vmem:[#allocation8] sm:$0xff]  ;;  %p1646_p4 = pnand %p1645_p1, %p1639_p11 }
  0x8a   : > { %1249 = vmatprep.subr.mxu1 %v1720_v0  ;;  %1338 = vmatprep.subr.mxu0 %v1720_v0  ;;  %v338_v48 = vld [vmem:[%s1951_s26 + $0x8] sm:$0xff]  ;;  %v339_v49 = vld [vmem:[%s1951_s26 + $0x10] sm:$0xff]  ;;  %v340_v50 = vld [vmem:[%s1951_s26 + $0x18] sm:$0xff] }
  0x8b   : > { %1250 = vmatpush3.msra.mxu1 %v363_v8  ;;  %1339 = vmatpush3.msra.mxu0 %v645_v22  ;;  %v341_v51 = vld [vmem:[%s1951_s26 + $0x20] sm:$0xff]  ;;  %v342_v52 = vld [vmem:[%s1951_s26 + $0x28] sm:$0xff]  ;;  %v343_v53 = vld [vmem:[%s1951_s26 + $0x30] sm:$0xff] }
  0x8c   : > { %1251 = vmatprep.subr.mxu1 %v1720_v0  ;;  %1340 = vmatprep.subr.mxu0 %v1720_v0  ;;  %v344_v54 = vld [vmem:[%s1951_s26 + $0x38] sm:$0xff]  ;;  %v345_v55 = vld [vmem:[%s1951_s26 + $0x40] sm:$0xff]  ;;  %v346_v56 = vld [vmem:[%s1951_s26 + $0x48] sm:$0xff] }
  0x8d   : > { %1252 = vmatpush3.msra.mxu1 %v362_v9  ;;  %1341 = vmatpush3.msra.mxu0 %v644_v24  ;;  %v347_v57 = vld [vmem:[%s1951_s26 + $0x50] sm:$0xff]  ;;  %v348_v58 = vld [vmem:[%s1951_s26 + $0x58] sm:$0xff]  ;;  %v349_v59 = vld [vmem:[%s1951_s26 + $0x60] sm:$0xff] }
  0x8e   : > { %1253 = vmatprep.subr.mxu1 %v1720_v0  ;;  %1342 = vmatprep.subr.mxu0 %v1720_v0  ;;  %v350_v60 = vld [vmem:[%s1951_s26 + $0x68] sm:$0xff]  ;;  %v351_v61 = vld [vmem:[%s1951_s26 + $0x70] sm:$0xff]  ;;  %v352_v62 = vld [vmem:[%s1951_s26 + $0x78] sm:$0xff]  ;;  %s968_s26 = scalar_lea.sflag [#allocation4], %s1937_s12 }
  0x8f   : > { %1254 = vmatpush3.msra.mxu1 %v361_v10  ;;  %1343 = vmatpush3.msra.mxu0 %v643_v29  ;;  %v638_v63 = vld [vmem:[#allocation7 + $0x90] sm:$0xff]  ;;  %v637_v1 = vld [vmem:[#allocation7 + $0x88] sm:$0xff]  ;;  %v636_v2 = vld [vmem:[#allocation7 + $0x80] sm:$0xff] }
  0x90   : > { %1255 = vmatprep.subr.mxu1 %v1720_v0  ;;  %1344 = vmatprep.subr.mxu0 %v1720_v0  ;;  %v744_v3 = vld [vmem:[#allocation8 + $0xf8] sm:$0xff]  ;;  %v743_v4 = vld [vmem:[#allocation8 + $0xf0] sm:$0xff]  ;;  %v742_v5 = vld [vmem:[#allocation8 + $0xe8] sm:$0xff] }
  0x91   : > { %1256 = vmatpush3.msra.mxu1 %v360_v13  ;;  %1345 = vmatpush3.msra.mxu0 %v642_v31  ;;  %v741_v6 = vld [vmem:[#allocation8 + $0xe0] sm:$0xff]  ;;  %v740_v7 = vld [vmem:[#allocation8 + $0xd8] sm:$0xff]  ;;  %v739_v8 = vld [vmem:[#allocation8 + $0xd0] sm:$0xff] }
  0x92   : > { %1257 = vmatprep.subr.mxu1 %v1720_v0  ;;  %1346 = vmatprep.subr.mxu0 %v1720_v0  ;;  %v738_v9 = vld [vmem:[#allocation8 + $0xc8] sm:$0xff]  ;;  %v737_v10 = vld [vmem:[#allocation8 + $0xc0] sm:$0xff]  ;;  %v736_v11 = vld [vmem:[#allocation8 + $0xb8] sm:$0xff] }
  0x93   : > { %1258 = vmatpush3.msra.mxu1 %v359_v15  ;;  %1347 = vmatpush3.msra.mxu0 %v641_v33  ;;  %v735_v12 = vld [vmem:[#allocation8 + $0xb0] sm:$0xff]  ;;  %v734_v13 = vld [vmem:[#allocation8 + $0xa8] sm:$0xff]  ;;  %v733_v14 = vld [vmem:[#allocation8 + $0xa0] sm:$0xff] }
  0x94   : > { %1259 = vmatprep.subr.mxu1 %v1720_v0  ;;  %1348 = vmatprep.subr.mxu0 %v1720_v0  ;;  %v732_v15 = vld [vmem:[#allocation8 + $0x98] sm:$0xff]  ;;  %v731_v16 = vld [vmem:[#allocation8 + $0x90] sm:$0xff]  ;;  %v729_v18 = vld [vmem:[#allocation8 + $0x80] sm:$0xff] }
  0x95   : > { %1260 = vmatpush3.msra.mxu1 %v358_v17  ;;  %1349 = vmatpush3.msra.mxu0 %v640_v35  ;;  %v730_v17 = vld [vmem:[#allocation8 + $0x88] sm:$0xff]  ;;  %v1110_v24 = vld [vmem:[%s2105_s5] ss:$0 sm:$0xff] }
  0x96   : > { %1261 = vmatprep.subr.mxu1 %v1720_v0  ;;  %1350 = vmatprep.subr.mxu0 %v1720_v0 }
  0x97   : > { %1262 = vmatpush3.msra.mxu1 %v357_v19  ;;  %1351 = vmatpush3.msra.mxu0 %v639_v37  ;;  %v1109_v19 = vld [vmem:[%s2103_s3] ss:$0 sm:$0xff] }
  0x98   : > { %1263 = vmatprep.subr.mxu1 %v1720_v0  ;;  %1352 = vmatprep.subr.mxu0 %v1720_v0 }
  0x99   : > { %1264 = vmatpush3.msra.mxu1 %v356_v21  ;;  %1353 = vmatpush3.msra.mxu0 %v638_v63 }
  0x9a   : > { %1265 = vmatprep.subr.mxu1 %v1720_v0  ;;  %1354 = vmatprep.subr.mxu0 %v1720_v0 }
  0x9b   : > { %1266 = vmatpush3.msra.mxu1 %v355_v23  ;;  %1355 = vmatpush3.msra.mxu0 %v637_v1 }
  0x9c   : > { %1268 = vmatmul.mubr.f32.vlgmr.msra.gmra.mxu1 %v336_v25  ;;  %1270 = vmatprep.subr.mxu1 %v462_v26 }
  0x9d   : > { %1271 = vmatpush3.msra.mxu1 %v462_v26  ;;  %1302 = vmatprep.mubr.f32.mxu1 %v337_v27 }
  0x9e   : > { %1272 = vmatprep.subr.mxu1 %v461_v28  ;;  %1356 = vmatprep.subr.mxu0 %v1720_v0 }
  0x9f   : > { %1273 = vmatpush3.msra.mxu1 %v461_v28  ;;  %1357 = vmatpush3.msra.mxu0 %v636_v2 }
  0xa0   : > { %1274 = vmatprep.subr.mxu1 %v460_v30  ;;  %1417 = vmatprep.subr.mxu0 %v1720_v0 }
  0xa1   : > { %1275 = vmatpush3.msra.mxu1 %v460_v30 }
  0xa2   : > { %1276 = vmatprep.subr.mxu1 %v459_v32 }
  0xa3   : > { %1277 = vmatpush3.msra.mxu1 %v459_v32 }
  0xa4   : > { %1278 = vmatprep.subr.mxu1 %v458_v34 }
  0xa5   : > { %1279 = vmatpush3.msra.mxu1 %v458_v34 }
  0xa6   : > { %1280 = vmatprep.subr.mxu1 %v457_v36 }
  0xa7   : > { %1281 = vmatpush3.msra.mxu1 %v457_v36 }
  0xa8   : > { %1282 = vmatprep.subr.mxu1 %v456_v38 }
  0xa9   : > { %1283 = vmatpush3.msra.mxu1 %v456_v38 }
  0xaa   : > { %1284 = vmatprep.subr.mxu1 %v455_v39 }
  0xab   : > { %1285 = vmatpush3.msra.mxu1 %v455_v39 }
  0xac   : > { %1286 = vmatprep.subr.mxu1 %v454_v40 }
  0xad   : > { %1287 = vmatpush3.msra.mxu1 %v454_v40 }
  0xae   : > { %1288 = vmatprep.subr.mxu1 %v453_v41 }
  0xaf   : > { %1289 = vmatpush3.msra.mxu1 %v453_v41 }
  0xb0   : > { %1290 = vmatprep.subr.mxu1 %v452_v42 }
  0xb1   : > { %1291 = vmatpush3.msra.mxu1 %v452_v42 }
  0xb2   : > { %1292 = vmatprep.subr.mxu1 %v451_v43 }
  0xb3   : > { %1293 = vmatpush3.msra.mxu1 %v451_v43 }
  0xb4   : > { %1294 = vmatprep.subr.mxu1 %v450_v44 }
  0xb5   : > { %1295 = vmatpush3.msra.mxu1 %v450_v44 }
  0xb6   : > { %1296 = vmatprep.subr.mxu1 %v449_v45 }
  0xb7   : > { %1297 = vmatpush3.msra.mxu1 %v449_v45 }
  0xb8   : > { %1298 = vmatprep.subr.mxu1 %v448_v46 }
  0xb9   : > { %1299 = vmatpush3.msra.mxu1 %v448_v46 }
  0xba   : > { %1300 = vmatprep.subr.mxu1 %v447_v47 }
  0xbb   : > { %1301 = vmatpush3.msra.mxu1 %v447_v47 }
  0xbc   : > { %1303 = vmatmul.mubr.f32.vlgmr.msra.gmra.mxu1 %v338_v48  ;;  %1361 = vmatprep.subr.mxu1 %v744_v3 }
  0xbd   : > { %1305 = vmatprep.mubr.f32.mxu1 %v339_v49  ;;  %1362 = vmatpush3.msra.mxu1 %v744_v3 }
  0xbe   : > { %1363 = vmatprep.subr.mxu1 %v743_v4 }
  0xbf   : > { %1364 = vmatpush3.msra.mxu1 %v743_v4 }
  0xc0   : > { %1306 = vmatmul.mubr.f32.gmra.mxu1 %v340_v50  ;;  %1365 = vmatprep.subr.mxu1 %v742_v5 }
  0xc1   : > { %1308 = vmatprep.mubr.f32.mxu1 %v341_v51  ;;  %1366 = vmatpush3.msra.mxu1 %v742_v5 }
  0xc2   : > { %1367 = vmatprep.subr.mxu1 %v741_v6 }
  0xc3   : > { %1368 = vmatpush3.msra.mxu1 %v741_v6 }
  0xc4   : > { %1309 = vmatmul.mubr.f32.gmra.mxu1 %v342_v52  ;;  %1369 = vmatprep.subr.mxu1 %v740_v7 }
  0xc5   : > { %1311 = vmatprep.mubr.f32.mxu1 %v343_v53  ;;  %1370 = vmatpush3.msra.mxu1 %v740_v7 }
  0xc6   : > { %1371 = vmatprep.subr.mxu1 %v739_v8 }
  0xc7   : > { %1372 = vmatpush3.msra.mxu1 %v739_v8 }
  0xc8   : > { %1312 = vmatmul.mubr.f32.gmra.mxu1 %v344_v54  ;;  %1373 = vmatprep.subr.mxu1 %v738_v9 }
  0xc9   : > { %1314 = vmatprep.mubr.f32.mxu1 %v345_v55  ;;  %1374 = vmatpush3.msra.mxu1 %v738_v9 }
  0xca   : > { %1375 = vmatprep.subr.mxu1 %v737_v10 }
  0xcb   : > { %1376 = vmatpush3.msra.mxu1 %v737_v10 }
  0xcc   : > { %1315 = vmatmul.mubr.f32.gmra.mxu1 %v346_v56  ;;  %1377 = vmatprep.subr.mxu1 %v736_v11 }
  0xcd   : > { %1317 = vmatprep.mubr.f32.mxu1 %v347_v57  ;;  %1378 = vmatpush3.msra.mxu1 %v736_v11 }
  0xce   : > { %1379 = vmatprep.subr.mxu1 %v735_v12 }
  0xcf   : > { %1380 = vmatpush3.msra.mxu1 %v735_v12 }
  0xd0   : > { %1318 = vmatmul.mubr.f32.gmra.mxu1 %v348_v58  ;;  %1381 = vmatprep.subr.mxu1 %v734_v13 }
  0xd1   : > { %1320 = vmatprep.mubr.f32.mxu1 %v349_v59  ;;  %1382 = vmatpush3.msra.mxu1 %v734_v13 }
  0xd2   : > { %1383 = vmatprep.subr.mxu1 %v733_v14 }
  0xd3   : > { %1384 = vmatpush3.msra.mxu1 %v733_v14 }
  0xd4   : > { %1321 = vmatmul.mubr.f32.gmra.mxu1 %v350_v60  ;;  %1385 = vmatprep.subr.mxu1 %v732_v15 }
  0xd5   : > { %1323 = vmatprep.mubr.f32.mxu1 %v351_v61  ;;  %1386 = vmatpush3.msra.mxu1 %v732_v15 }
  0xd6   : > { %1387 = vmatprep.subr.mxu1 %v731_v16 }
  0xd7   : > { %1388 = vmatpush3.msra.mxu1 %v731_v16 }
  0xd8   : > { %1324 = vmatmul.mubr.f32.gmra.mxu1 %v352_v62  ;;  %1389 = vmatprep.subr.mxu1 %v730_v17 }
  0xd9   : > { %1390 = vmatpush3.msra.mxu1 %v730_v17 }
  0xda   : > { %1391 = vmatprep.subr.mxu1 %v729_v18 }
  0xdb   : > { %1392 = vmatpush3.msra.mxu1 %v729_v18 }
 0x15c   : > { %v443_v20 = vpop.f32.mrf.mxu1 }
 0x15d   : > { %v444_v21 = vadd.f32 %v1109_v19, %v443_v20 }
 0x15e   : > { %v1269_v22 = vpop.f32.mrf.mxu1 }
 0x15f   : > { %v614_v23 = vmax.f32 %v444_v21, 0.0 }
 0x161   : > { %1359 = vmatmul.mubr.f32.vlgmr.msra.gmra.mxu0 %v614_v23 }
 0x162   : > { %1449 = vmatprep.mubr.msk.f32.mxu0 %vm1721_vm0, %v1720_v0 }
 0x17c   : > { %v1304_v25 = vpop.f32.mrf.mxu1 }
 0x17d   : > { %v541_v26 = vadd.f32 %v1304_v25, %v1110_v24 }
 0x17e   : > { %v535_v27 = vpop.f32.mrf.mxu1 }
 0x17f   : > { %v536_v28 = vadd.f32 %v1110_v24, %v535_v27  ;;  %v616_v31 = vmax.f32 %v541_v26, 0.0  ;;  %v1114_v26 = vld [vmem:[%s2105_s5 + $0x1] ss:$0 sm:$0xff] }
 0x180   : > { %v1307_v29 = vpop.f32.mrf.mxu1 }
 0x181   : > { %v615_v30 = vmax.f32 %v536_v28, 0.0  ;;  %v551_v32 = vadd.f32 %v1307_v29, %v1110_v24 }
 0x182   : > { %v545_v33 = vpop.f32.mrf.mxu1 }
 0x183   : > { %v546_v34 = vadd.f32 %v1110_v24, %v545_v33  ;;  %1393 = vmatprep.mubr.f32.mxu1 %v615_v30  ;;  %v618_v37 = vmax.f32 %v551_v32, 0.0 }
 0x184   : > { %v1310_v35 = vpop.f32.mrf.mxu1  ;;  %1394 = vmatmul.mubr.f32.vlgmr.msra.gmra.mxu1 %v616_v31 }
 0x185   : > { %v617_v36 = vmax.f32 %v546_v34, 0.0  ;;  %v561_v38 = vadd.f32 %v1310_v35, %v1110_v24 }
 0x186   : > { %v555_v39 = vpop.f32.mrf.mxu1 }
 0x187   : > { %v556_v40 = vadd.f32 %v1110_v24, %v555_v39  ;;  %1396 = vmatprep.mubr.f32.mxu1 %v617_v36  ;;  %v620_v43 = vmax.f32 %v561_v38, 0.0 }
 0x188   : > { %v1313_v41 = vpop.f32.mrf.mxu1  ;;  %1397 = vmatmul.mubr.f32.gmra.mxu1 %v618_v37 }
 0x189   : > { %v619_v42 = vmax.f32 %v556_v40, 0.0  ;;  %v571_v44 = vadd.f32 %v1313_v41, %v1110_v24 }
 0x18a   : > { %v565_v45 = vpop.f32.mrf.mxu1 }
 0x18b   : > { %v566_v46 = vadd.f32 %v1110_v24, %v565_v45  ;;  %1399 = vmatprep.mubr.f32.mxu1 %v619_v42  ;;  %v622_v49 = vmax.f32 %v571_v44, 0.0  ;;  %v1113_v44 = vld [vmem:[%s2103_s3 + $0x1] ss:$0 sm:$0xff] }
 0x18c   : > { %v1316_v47 = vpop.f32.mrf.mxu1  ;;  %1400 = vmatmul.mubr.f32.gmra.mxu1 %v620_v43 }
 0x18d   : > { %v621_v48 = vmax.f32 %v566_v46, 0.0  ;;  %v581_v50 = vadd.f32 %v1316_v47, %v1110_v24 }
 0x18e   : > { %v575_v51 = vpop.f32.mrf.mxu1 }
 0x18f   : > { %v576_v52 = vadd.f32 %v1110_v24, %v575_v51  ;;  %1402 = vmatprep.mubr.f32.mxu1 %v621_v48  ;;  %v624_v55 = vmax.f32 %v581_v50, 0.0 }
 0x190   : > { %v1319_v53 = vpop.f32.mrf.mxu1  ;;  %1403 = vmatmul.mubr.f32.gmra.mxu1 %v622_v49 }
 0x191   : > { %v623_v54 = vmax.f32 %v576_v52, 0.0  ;;  %v591_v56 = vadd.f32 %v1319_v53, %v1110_v24 }
 0x192   : > { %v585_v57 = vpop.f32.mrf.mxu1 }
 0x193   : > { %v586_v58 = vadd.f32 %v1110_v24, %v585_v57  ;;  %1405 = vmatprep.mubr.f32.mxu1 %v623_v54  ;;  %v626_v61 = vmax.f32 %v591_v56, 0.0 }
 0x194   : > { %v1322_v59 = vpop.f32.mrf.mxu1  ;;  %1406 = vmatmul.mubr.f32.gmra.mxu1 %v624_v55 }
 0x195   : > { %v625_v60 = vmax.f32 %v586_v58, 0.0  ;;  %v601_v62 = vadd.f32 %v1322_v59, %v1110_v24 }
 0x196   : > { %v595_v63 = vpop.f32.mrf.mxu1 }
 0x197   : > { %v596_v1 = vadd.f32 %v1110_v24, %v595_v63  ;;  %1408 = vmatprep.mubr.f32.mxu1 %v625_v60  ;;  %v628_v4 = vmax.f32 %v601_v62, 0.0 }
 0x198   : > { %v1325_v2 = vpop.f32.mrf.mxu1  ;;  %1409 = vmatmul.mubr.f32.gmra.mxu1 %v626_v61 }
 0x199   : > { %v627_v3 = vmax.f32 %v596_v1, 0.0  ;;  %v611_v5 = vadd.f32 %v1325_v2, %v1110_v24 }
 0x19a   : > { %v605_v6 = vpop.f32.mrf.mxu1 }
 0x19b   : > { %v606_v7 = vadd.f32 %v1110_v24, %v605_v6  ;;  %1411 = vmatprep.mubr.f32.mxu1 %v627_v3  ;;  %v630_v9 = vmax.f32 %v611_v5, 0.0 }
 0x19c   : > { %1412 = vmatmul.mubr.f32.gmra.mxu1 %v628_v4 }
 0x19d   : > { %v629_v8 = vmax.f32 %v606_v7, 0.0 }
 0x19f   : > { %1414 = vmatprep.mubr.f32.mxu1 %v629_v8 }
 0x1a0   : > { %1415 = vmatmul.mubr.f32.gmra.mxu1 %v630_v9 }
 0x221   : > { %v2027_v10 = vpop.f32.mrf.mxu0 }
 0x222   : > { %v725_v46 = vadd.f32 %v1113_v44, %v2027_v10 }
 0x223   : > { %v1360_v11 = vpop.f32.mrf.mxu0 }
 0x244   : > { %v1395_v12 = vpop.f32.mrf.mxu1 }
 0x245   : > { %v823_v43 = vadd.f32 %v1395_v12, %v1114_v26 }
 0x246   : > { %v817_v13 = vpop.f32.mrf.mxu1 }
 0x247   : > { %v818_v45 = vadd.f32 %v1114_v26, %v817_v13 }
 0x248   : > { %v1398_v14 = vpop.f32.mrf.mxu1 }
 0x249   : > { %v833_v41 = vadd.f32 %v1398_v14, %v1114_v26 }
 0x24a   : > { %v827_v15 = vpop.f32.mrf.mxu1 }
 0x24b   : > { %v828_v42 = vadd.f32 %v1114_v26, %v827_v15 }
 0x24c   : > { %v1401_v16 = vpop.f32.mrf.mxu1 }
 0x24d   : > { %v843_v39 = vadd.f32 %v1401_v16, %v1114_v26 }
 0x24e   : > { %v837_v17 = vpop.f32.mrf.mxu1 }
 0x24f   : > { %v838_v40 = vadd.f32 %v1114_v26, %v837_v17 }
 0x250   : > { %v1404_v18 = vpop.f32.mrf.mxu1 }
 0x251   : > { %v853_v37 = vadd.f32 %v1404_v18, %v1114_v26 }
 0x252   : > { %v847_v19 = vpop.f32.mrf.mxu1 }
 0x253   : > { %v848_v38 = vadd.f32 %v1114_v26, %v847_v19 }
 0x254   : > { %v1407_v20 = vpop.f32.mrf.mxu1 }
 0x255   : > { %v863_v35 = vadd.f32 %v1407_v20, %v1114_v26 }
 0x256   : > { %v857_v21 = vpop.f32.mrf.mxu1 }
 0x257   : > { %v858_v36 = vadd.f32 %v1114_v26, %v857_v21 }
 0x258   : > { %v1410_v22 = vpop.f32.mrf.mxu1 }
 0x259   : > { %v873_v33 = vadd.f32 %v1410_v22, %v1114_v26 }
 0x25a   : > { %v867_v23 = vpop.f32.mrf.mxu1 }
 0x25b   : > { %v868_v34 = vadd.f32 %v1114_v26, %v867_v23 }
 0x25c   : > { %v1413_v24 = vpop.f32.mrf.mxu1 }
 0x25d   : > { %v883_v31 = vadd.f32 %v1413_v24, %v1114_v26 }
 0x25e   : > { %v877_v25 = vpop.f32.mrf.mxu1 }
 0x25f   : > { %v878_v32 = vadd.f32 %v1114_v26, %v877_v25 }
 0x260   : > { %v1416_v27 = vpop.f32.mrf.mxu1 }
 0x261   : > { %v893_v28 = vadd.f32 %v1416_v27, %v1114_v26 }
 0x262   : > { %v887_v29 = vpop.f32.mrf.mxu1 }
 0x263   : > { %1418 = vmatpush3.xpose.msra.mxu0 %v893_v28  ;;  %v888_v30 = vadd.f32 %v1114_v26, %v887_v29 }
 0x264   : > { %1419 = vmatprep.subr.mxu0 %v1720_v0 }
 0x267   : > { %1420 = vmatpush3.xpose.msra.mxu0 %v888_v30 }
 0x268   : > { %1421 = vmatprep.subr.mxu0 %v1720_v0 }
 0x26b   : > { %1422 = vmatpush3.xpose.msra.mxu0 %v883_v31 }
 0x26c   : > { %1423 = vmatprep.subr.mxu0 %v1720_v0 }
 0x26f   : > { %1424 = vmatpush3.xpose.msra.mxu0 %v878_v32 }
 0x270   : > { %1425 = vmatprep.subr.mxu0 %v1720_v0 }
 0x273   : > { %1426 = vmatpush3.xpose.msra.mxu0 %v873_v33 }
 0x274   : > { %1427 = vmatprep.subr.mxu0 %v1720_v0 }
 0x277   : > { %1428 = vmatpush3.xpose.msra.mxu0 %v868_v34 }
 0x278   : > { %1429 = vmatprep.subr.mxu0 %v1720_v0 }
 0x27b   : > { %1430 = vmatpush3.xpose.msra.mxu0 %v863_v35 }
 0x27c   : > { %1431 = vmatprep.subr.mxu0 %v1720_v0 }
 0x27f   : > { %1432 = vmatpush3.xpose.msra.mxu0 %v858_v36 }
 0x280   : > { %1433 = vmatprep.subr.mxu0 %v1720_v0 }
 0x283   : > { %1434 = vmatpush3.xpose.msra.mxu0 %v853_v37 }
 0x284   : > { %1435 = vmatprep.subr.mxu0 %v1720_v0 }
 0x287   : > { %1436 = vmatpush3.xpose.msra.mxu0 %v848_v38 }
 0x288   : > { %1437 = vmatprep.subr.mxu0 %v1720_v0 }
 0x28b   : > { %1438 = vmatpush3.xpose.msra.mxu0 %v843_v39 }
 0x28c   : > { %1439 = vmatprep.subr.mxu0 %v1720_v0 }
 0x28f   : > { %1440 = vmatpush3.xpose.msra.mxu0 %v838_v40 }
 0x290   : > { %1441 = vmatprep.subr.mxu0 %v1720_v0 }
 0x293   : > { %1442 = vmatpush3.xpose.msra.mxu0 %v833_v41 }
 0x294   : > { %1443 = vmatprep.subr.mxu0 %v1720_v0 }
 0x297   : > { %1444 = vmatpush3.xpose.msra.mxu0 %v828_v42 }
 0x298   : > { %1445 = vmatprep.subr.mxu0 %v1720_v0 }
 0x29b   : > { %1446 = vmatpush3.xpose.msra.mxu0 %v823_v43 }
 0x29c   : > { %1447 = vmatprep.subr.mxu0 %v1720_v0 }
 0x29f   : > { %1448 = vmatpush3.xpose.msra.mxu0 %v818_v45 }
 0x2a2   : > { %1450 = vmatmul.mubr.f32.vlgmr.msra.gmra.mxu0 %v725_v46 }
 0x362   : > { %v962_v0 = vpop.f32.mrf.mxu0 }
 0x363   : > { %966 = vst [vmem:[%s335_s10] sm:$0xff] %v962_v0 }
 0x364   : > { %v1451_v47 = vpop.f32.mrf.mxu0 }
 0x365   : > { %1649 = shalt.err (!%p1646_p4)
}
 0x366   : > { %s1650_s13 = scalar_lea.hbm %s2059_s14, 128  ;;  %s1654_s16 = scalar_lea.hbm %s2106_s6, 256 }
 0x367   : > { %p1651_p5 = scmp.ne.s32.totalorder %s2059_s14, %s1650_s13  ;;  %p1655_p2 = scmp.lt.s32.totalorder %s2059_s14, %s2106_s6 }
 0x368   : > { %p1656_p6 = scmp.lt.s32.totalorder %s1654_s16, %s1650_s13 }
 0x369   : > { %p1652_p7 = pnand %p1651_p5, %p2131_p10 }
 0x36a   : > { %p1657_p12 = por %p1656_p6, %p1655_p2 }
 0x36b   : > { %p1653_p8 = pneg %p1652_p7 }
 0x36d   : > { %p1658_p0 = pnand %p1657_p12, %p1653_p8 }
 0x36f   : > { %1661 = shalt.err (!%p1658_p0)
}
 0x370   : > { %1464 = dma.vmem_to_hbm [thread:$0]  (%p2131_p10), %s2054_s15, 128, %s2059_s14, %s968_s26  }
 0x371 PF: > { %s993_s2 = sand.u32 1, %s1700_s21   ;;  %p2132_p3 = scmp.ne.s32.totalorder %s2115_s28, 0 }
 0x372   : > { %p2133_p11 = scmp.ge.s32.totalorder %s1712_s24, 2  ;;  %s994_s10 = scalar_lea.sflag [#allocation4], %s993_s2 }
 0x374   : > { %p1481_p9 = pnand %p2133_p11, %p2132_p3 }
 0x376   : > { %p1482_p13 = pneg %p1481_p9 }
 0x378   : > { %1695 = dma.done.wait (%p1482_p13), %s994_s10, 128  }
 0x379   : > { %1697 = vsyncadd (%p1482_p13), %s994_s10, 4294967168  ;;  %p23_p1 = scmp.ge.s32.totalorder %s1836_s19, 4   ;;  %s2134_s21 = smov %s1704_s22 }
 0x37a   : > { %s2135_s22 = smov %s1708_s23  ;;  %s2136_s23 = smov %s1852_s7 }
 0x37b   : > { %s2137_s24 = smov %s1836_s19  ;;  %25 = sbr.rel (!%p23_p1) target bundleno = 11 (0xb), region = 114 }
 0x380   :  { %999 = vsyncpa [#allocation3], 1 }
 0x381   :  { %1001 = vsyncpa [#allocation3 + $0x1], 1 }
 0x382   :  { %1002 = vsyncpa [#allocation6], 1 }
 0x383   :  { %1004 = vsyncpa [#allocation6 + $0x1], 1 }
 0x384   :  { %1005 = vsyncpa [#allocation9], 1 }
 0x385   :  { %1006 = vsyncpa [#allocation4], 1 }
 0x386   :  { %1008 = vsyncpa [#allocation4 + $0x1], 1 }

</bundles_post_ra>
